<compile_context>
chip_gen: v7x
topology: tpu7x:2x2x1
jax: 0.10.0
libtpu: 0.0.40
codegen_flags: <defaults>
</compile_context>

<pallas_src>
import jax
import jax.numpy as jnp
from jax.experimental import pallas as pl
from jax.experimental.pallas import tpu as pltpu

_BN_EPS = 1e-5


def _vmem_budget():
    """Generation-aware VMEM limit (bytes): ~3/4 of physical, capped at 100 MiB."""
    phys = 64 * 1024 * 1024
    try:
        info = pltpu.get_tpu_info()
        cap = getattr(info, "vmem_capacity_bytes", None)
        if cap:
            phys = int(cap)
    except Exception:
        pass
    return min((phys * 3) // 4, 100 * 1024 * 1024)


def _choose_tile(n, c, tile_budget_bytes):
    """Pick the N-tile width and the (zero-)padded N extent.

    Per-step live VMEM (dominated by the normalize pass):
      double-buffered x tile + double-buffered out tile (f32) +
      double-buffered bf16 (C,C) attention block + f32 (C,C) scratch.
    """
    n128 = ((n + 127) // 128) * 128

    def live(t):
        return 4 * c * t * 4 + 4 * c * c * 2 + c * c * 4

    candidates = [t for t in (4096, 2048, 1024, 512, 256, 128) if t <= n128]
    if not candidates:
        candidates = [128]

    # Prefer the biggest tile that fits the budget AND exactly divides the
    # 128-aligned extent (no extra padding beyond lane alignment).
    for t in candidates:
        if live(t) <= tile_budget_bytes and n128 % t == 0:
            return t, n128
    for t in candidates:
        if live(t) <= tile_budget_bytes:
            return t, ((n128 + t - 1) // t) * t
    t = candidates[-1]
    return t, ((n128 + t - 1) // t) * t


def _attn_stats_kernel(gamma_ref, x_ref, attn_ref, stats_ref, energy_acc, attn_vmem):
    # grid = (B, 2, N//tn).  Phase 0: energy accumulation + softmax (+ gamma fold).
    # Phase 1: y = attn_g @ x + x recomputed per tile, BN sum/sumsq accumulated.
    p = pl.program_id(1)
    n = pl.program_id(2)
    n_last = pl.num_programs(2) - 1

    x = x_ref[0]                              # (C, tn), input dtype
    xb = x.astype(jnp.bfloat16)               # MXU operand

    @pl.when(p == 0)
    def _():
        @pl.when(n == 0)
        def _():
            energy_acc[...] = jnp.zeros_like(energy_acc)

        # energy += x @ x^T over this N-tile (bf16 MXU inputs, f32 accumulation).
        energy_acc[...] += jax.lax.dot_general(
            xb, xb, (((1,), (1,)), ((), ())),
            preferred_element_type=jnp.float32)

        @pl.when(n == n_last)
        def _():
            energy = energy_acc[...]                                   # (C, C)
            # softmax(rowmax(e) - e) == exp(rowmin(e) - e) / sum(...): one reduce.
            pexp = jnp.exp(jnp.min(energy, axis=-1, keepdims=True) - energy)
            inv = pl.reciprocal(jnp.sum(pexp, axis=-1, keepdims=True), approx=True)
            attn_g = (pexp * inv) * gamma_ref[0]      # fold gamma once per batch
            attn_vmem[...] = attn_g.astype(jnp.bfloat16)
            attn_ref[0] = attn_vmem[...]              # tiny bf16 HBM side output

    @pl.when(p == 1)
    def _():
        @pl.when(n == 0)
        def _():
            stats_ref[...] = jnp.zeros_like(stats_ref)

        out = jnp.dot(attn_vmem[...], xb,
                      preferred_element_type=jnp.float32)              # (C, tn)
        y = out + x.astype(jnp.float32)
        stats_ref[0] += jnp.concatenate(
            [jnp.sum(y, axis=-1, keepdims=True),
             jnp.sum(y * y, axis=-1, keepdims=True)], axis=-1)         # (C, 2)


def _apply_bn_kernel(attn_ref, x_ref, scale_ref, shift_ref, o_ref):
    # grid = (B, N//tn).  Recompute y = attn_g @ x + x (no y HBM round-trip),
    # then apply the folded BatchNorm affine.
    x = x_ref[0]                                                        # (C, tn)
    out = jnp.dot(attn_ref[0], x.astype(jnp.bfloat16),
                  preferred_element_type=jnp.float32)
    y = out + x.astype(jnp.float32)
    o_ref[0] = (y * scale_ref[...] + shift_ref[...]).astype(o_ref.dtype)


def cam_module_forward(x, gamma, bn_weight, bn_bias, *, eps=_BN_EPS):
    B, C, H, W = x.shape
    N = H * W
    x3 = x.reshape(B, C, N)                 # keep input dtype; no HBM transposes

    vmem_limit = _vmem_budget()
    tn, n_pad = _choose_tile(N, C, vmem_limit // 2)
    if n_pad != N:
        # Zero padding is exact: zeros add nothing to energy or to sum/sumsq.
        x3 = jnp.pad(x3, ((0, 0), (0, 0), (0, n_pad - N)))
    nt = n_pad // tn

    cparams_a = pltpu.CompilerParams(
        dimension_semantics=("parallel", "arbitrary", "arbitrary"),
        vmem_limit_bytes=vmem_limit)
    cparams_b = pltpu.CompilerParams(
        dimension_semantics=("parallel", "parallel"),
        vmem_limit_bytes=vmem_limit)

    # Fused pass: attention (gamma-folded, bf16) + BN partial statistics.
    attn, stats = pl.pallas_call(
        _attn_stats_kernel,
        out_shape=(
            jax.ShapeDtypeStruct((B, C, C), jnp.bfloat16),
            jax.ShapeDtypeStruct((B, C, 2), jnp.float32),
        ),
        grid=(B, 2, nt),
        in_specs=[
            pl.BlockSpec(memory_space=pltpu.MemorySpace.SMEM),          # gamma (1,)
            pl.BlockSpec((1, C, tn), lambda b, p, n: (b, 0, n)),        # x tile
        ],
        out_specs=(
            pl.BlockSpec((1, C, C), lambda b, p, n: (b, 0, 0)),
            pl.BlockSpec((1, C, 2), lambda b, p, n: (b, 0, 0)),
        ),
        scratch_shapes=[
            pltpu.VMEM((C, C), jnp.float32),      # energy accumulator
            pltpu.VMEM((C, C), jnp.bfloat16),     # gamma-folded attention
        ],
        compiler_params=cparams_a,
    )(gamma, x3)

    # Tiny JAX fold: batch statistics -> per-channel scale/shift (training BN,
    # biased variance; clamp against one-pass cancellation going negative).
    cnt = jnp.float32(B * N)
    tot = jnp.sum(stats, axis=0)                                 # (C, 2)
    mean = tot[:, 0] / cnt
    var = jnp.maximum(tot[:, 1] / cnt - mean * mean, 0.0)
    inv = jax.lax.rsqrt(var + eps)
    w = bn_weight.reshape(C).astype(jnp.float32)
    b_ = bn_bias.reshape(C).astype(jnp.float32)
    scale = (w * inv).reshape(C, 1)
    shift = (b_ - mean * w * inv).reshape(C, 1)

    # Normalize pass: recompute y from x + attn (no y intermediate in HBM).
    out3 = pl.pallas_call(
        _apply_bn_kernel,
        out_shape=jax.ShapeDtypeStruct((B, C, n_pad), x.dtype),
        grid=(B, nt),
        in_specs=[
            pl.BlockSpec((1, C, C), lambda b, n: (b, 0, 0)),
            pl.BlockSpec((1, C, tn), lambda b, n: (b, 0, n)),
            pl.BlockSpec((C, 1), lambda b, n: (0, 0)),
            pl.BlockSpec((C, 1), lambda b, n: (0, 0)),
        ],
        out_specs=pl.BlockSpec((1, C, tn), lambda b, n: (b, 0, n)),
        compiler_params=cparams_b,
    )(attn, x3, scale, shift)

    if n_pad != N:
        out3 = out3[:, :, :N]
    return out3.reshape(B, C, H, W)


def _reference(x, gamma, bn_weight, bn_bias, eps=_BN_EPS, match_kernel=False):
    # Pure-JAX reference mirroring the PyTorch forward (training-mode BN).
    # match_kernel=True mimics the kernel's bf16 MXU inputs for fair comparison.
    B, C, H, W = x.shape
    xf = x.reshape(B, C, -1).astype(jnp.float32)
    if match_kernel:
        xq = xf.astype(jnp.bfloat16).astype(jnp.float32)
    else:
        xq = xf
    energy = jnp.einsum("bcn,bdn->bcd", xq, xq)
    e_new = jnp.max(energy, axis=-1, keepdims=True) - energy
    attn = jax.nn.softmax(e_new, axis=-1)
    attn_g = attn * gamma.reshape(())
    if match_kernel:
        attn_g = attn_g.astype(jnp.bfloat16).astype(jnp.float32)
    y = jnp.einsum("bcd,bdn->bcn", attn_g, xq) + xf
    mean = jnp.mean(y, axis=(0, 2), keepdims=True)
    var = jnp.mean((y - mean) ** 2, axis=(0, 2), keepdims=True)
    o = (y - mean) * jax.lax.rsqrt(var + eps)
    o = o * bn_weight.reshape(1, C, 1) + bn_bias.reshape(1, C, 1)
    return o.reshape(B, C, H, W)


if __name__ == "__main__":
    key = jax.random.PRNGKey(0)
    B, C, H, W = 2, 4, 16, 16
    x = jax.random.normal(key, (B, C, H, W), dtype=jnp.float32)

    # Deterministic parameter init matching CAM_Module.__init__:
    gamma0 = jnp.zeros((1,), dtype=jnp.float32)       # nn.Parameter(torch.zeros(1))
    bn_w = jnp.ones((C,), dtype=jnp.float32)          # BatchNorm2d weight (default 1)
    bn_b = jnp.zeros((C,), dtype=jnp.float32)         # BatchNorm2d bias   (default 0)

    out = cam_module_forward(x, gamma0, bn_w, bn_b)
    jax.block_until_ready(out)
    assert out.shape == (B, C, H, W) and out.dtype == jnp.float32
    err0 = float(jnp.max(jnp.abs(out - _reference(x, gamma0, bn_w, bn_b))))
    assert err0 < 1e-3, f"gamma=0 max abs error {err0}"

    # Exercise the attention path (nonzero gamma) against a precision-matched ref.
    gamma1 = jnp.full((1,), 0.5, dtype=jnp.float32)
    out1 = cam_module_forward(x, gamma1, bn_w, bn_b)
    jax.block_until_ready(out1)
    err1 = float(jnp.max(jnp.abs(
        out1 - _reference(x, gamma1, bn_w, bn_b, match_kernel=True))))
    assert err1 < 2e-2, f"gamma=0.5 max abs error {err1}"

    # Non-128-divisible spatial extent -> zero-padding path.
    x2 = jax.random.normal(jax.random.PRNGKey(1), (B, C, 12, 12), dtype=jnp.float32)
    out2 = cam_module_forward(x2, gamma1, bn_w, bn_b)
    jax.block_until_ready(out2)
    err2 = float(jnp.max(jnp.abs(
        out2 - _reference(x2, gamma1, bn_w, bn_b, match_kernel=True))))
    assert err2 < 2e-2, f"padded-N max abs error {err2}"

    print("KERNEL_OK")
</pallas_src>

<mosaic_0001>
module attributes {stable_mosaic.version = 11 : i64} {
  func.func @_attn_stats_kernel(%arg0: i32, %arg1: i32, %arg2: i32, %arg3: memref<1xf32, #tpu.memory_space<smem>>, %arg4: memref<1x4x256xf32, #tpu.memory_space<vmem>>, %arg5: memref<1x4x4xbf16, #tpu.memory_space<vmem>>, %arg6: memref<1x4x2xf32, #tpu.memory_space<vmem>>, %arg7: memref<4x4xf32, #tpu.memory_space<vmem>>, %arg8: memref<4x4xbf16, #tpu.memory_space<vmem>>) attributes {dimension_semantics = [#tpu.dimension_semantics<parallel>, #tpu.dimension_semantics<arbitrary>, #tpu.dimension_semantics<arbitrary>], iteration_bounds = array<i64: 2, 2, 1>, scalar_prefetch = 0 : i64, scratch_operands = 2 : i64, tpu.core_type = #tpu.core_type<tc>, window_params = [{transform_indices = @transform_0, window_bounds = array<i64: 1>}, {transform_indices = @transform_1, window_bounds = array<i64: 1, 4, 256>}, {transform_indices = @transform_2, window_bounds = array<i64: 1, 4, 4>}, {transform_indices = @transform_3, window_bounds = array<i64: 1, 4, 2>}]} {
    %c0 = arith.constant 0 : index
    %c0_0 = arith.constant 0 : index
    %c0_1 = arith.constant 0 : index
    %0 = vector.load %arg4[%c0, %c0_0, %c0_1] : memref<1x4x256xf32, #tpu.memory_space<vmem>>, vector<1x4x256xf32>
    %1 = vector.shape_cast %0 : vector<1x4x256xf32> to vector<4x256xf32>
    %2 = arith.truncf %1 : vector<4x256xf32> to vector<4x256xbf16>
    %c0_i32 = arith.constant 0 : i32
    %3 = arith.cmpi eq, %arg1, %c0_i32 : i32
    %4 = arith.extui %3 : i1 to i32
    %c0_i32_2 = arith.constant 0 : i32
    %5 = arith.cmpi ne, %4, %c0_i32_2 : i32
    scf.if %5 {
      %c0_i32_4 = arith.constant 0 : i32
      %9 = arith.cmpi eq, %arg2, %c0_i32_4 : i32
      %10 = arith.extui %9 : i1 to i32
      %c0_i32_5 = arith.constant 0 : i32
      %11 = arith.cmpi ne, %10, %c0_i32_5 : i32
      scf.if %11 {
        %cst_12 = arith.constant 0.000000e+00 : f32
        %19 = vector.broadcast %cst_12 : f32 to vector<4x4xf32>
        %c0_13 = arith.constant 0 : index
        %c0_14 = arith.constant 0 : index
        %20 = vector.load %arg7[%c0_13, %c0_14] : memref<4x4xf32, #tpu.memory_space<vmem>>, vector<4x4xf32>
        tpu.vector_store %arg7[%c0_13, %c0_14], %19 {strides = array<i32>} : memref<4x4xf32, #tpu.memory_space<vmem>>, vector<4x4xf32>,
      } else {
      }
      %c0_6 = arith.constant 0 : index
      %c0_7 = arith.constant 0 : index
      %12 = vector.load %arg7[%c0_6, %c0_7] : memref<4x4xf32, #tpu.memory_space<vmem>>, vector<4x4xf32>
      %cst = arith.constant dense<0.000000e+00> : vector<4x4xf32>
      %13 = tpu.matmul %2, %2, %cst {dimension_numbers = #tpu.dot_dimension_numbers<[1], [1], [0], [0], [0, 0, 1, 0], [], []>} : vector<4x256xbf16>, vector<4x256xbf16>, vector<4x4xf32> -> vector<4x4xf32>
      %14 = arith.addf %12, %13 : vector<4x4xf32>
      %c0_8 = arith.constant 0 : index
      %c0_9 = arith.constant 0 : index
      %15 = vector.load %arg7[%c0_8, %c0_9] : memref<4x4xf32, #tpu.memory_space<vmem>>, vector<4x4xf32>
      tpu.vector_store %arg7[%c0_8, %c0_9], %14 {strides = array<i32>} : memref<4x4xf32, #tpu.memory_space<vmem>>, vector<4x4xf32>,
      %c0_i32_10 = arith.constant 0 : i32
      %16 = arith.cmpi eq, %arg2, %c0_i32_10 : i32
      %17 = arith.extui %16 : i1 to i32
      %c0_i32_11 = arith.constant 0 : i32
      %18 = arith.cmpi ne, %17, %c0_i32_11 : i32
      scf.if %18 {
        %c0_12 = arith.constant 0 : index
        %c0_13 = arith.constant 0 : index
        %19 = vector.load %arg7[%c0_12, %c0_13] : memref<4x4xf32, #tpu.memory_space<vmem>>, vector<4x4xf32>
        %cst_14 = arith.constant dense<0x7F800000> : vector<4xf32>
        %20 = vector.multi_reduction <minimumf>, %19, %cst_14 [1] : vector<4x4xf32> to vector<4xf32>
        %21 = vector.shape_cast %20 : vector<4xf32> to vector<4x1xf32>
        %22 = vector.broadcast %21 : vector<4x1xf32> to vector<4x4xf32>
        %23 = arith.subf %22, %19 : vector<4x4xf32>
        %24 = math.exp %23 : vector<4x4xf32>
        %cst_15 = arith.constant dense<0.000000e+00> : vector<4xf32>
        %25 = vector.multi_reduction <add>, %24, %cst_15 [1] : vector<4x4xf32> to vector<4xf32>
        %26 = vector.shape_cast %25 : vector<4xf32> to vector<4x1xf32>
        %27 = tpu.reciprocal %26 {approx = true} : vector<4x1xf32> -> vector<4x1xf32>
        %28 = vector.broadcast %27 : vector<4x1xf32> to vector<4x4xf32>
        %29 = arith.mulf %24, %28 : vector<4x4xf32>
        %c0_16 = arith.constant 0 : index
        %30 = memref.load %arg3[%c0_16] : memref<1xf32, #tpu.memory_space<smem>>
        %31 = vector.broadcast %30 : f32 to vector<4x4xf32>
        %32 = arith.mulf %29, %31 : vector<4x4xf32>
        %33 = arith.truncf %32 : vector<4x4xf32> to vector<4x4xbf16>
        %c0_17 = arith.constant 0 : index
        %c0_18 = arith.constant 0 : index
        %34 = vector.load %arg8[%c0_17, %c0_18] : memref<4x4xbf16, #tpu.memory_space<vmem>>, vector<4x4xbf16>
        tpu.vector_store %arg8[%c0_17, %c0_18], %33 {strides = array<i32>} : memref<4x4xbf16, #tpu.memory_space<vmem>>, vector<4x4xbf16>,
        %c0_19 = arith.constant 0 : index
        %c0_20 = arith.constant 0 : index
        %35 = vector.load %arg8[%c0_19, %c0_20] : memref<4x4xbf16, #tpu.memory_space<vmem>>, vector<4x4xbf16>
        %c0_21 = arith.constant 0 : index
        %c0_22 = arith.constant 0 : index
        %c0_23 = arith.constant 0 : index
        %36 = vector.load %arg5[%c0_21, %c0_22, %c0_23] : memref<1x4x4xbf16, #tpu.memory_space<vmem>>, vector<1x4x4xbf16>
        %37 = vector.shape_cast %36 : vector<1x4x4xbf16> to vector<4x4xbf16>
        %38 = vector.shape_cast %35 : vector<4x4xbf16> to vector<1x4x4xbf16>
        tpu.vector_store %arg5[%c0_21, %c0_22, %c0_23], %38 {strides = array<i32>} : memref<1x4x4xbf16, #tpu.memory_space<vmem>>, vector<1x4x4xbf16>,
      } else {
      }
    } else {
    }
    %c1_i32 = arith.constant 1 : i32
    %6 = arith.cmpi eq, %arg1, %c1_i32 : i32
    %7 = arith.extui %6 : i1 to i32
    %c0_i32_3 = arith.constant 0 : i32
    %8 = arith.cmpi ne, %7, %c0_i32_3 : i32
    scf.if %8 {
      %c0_i32_4 = arith.constant 0 : i32
      %9 = arith.cmpi eq, %arg2, %c0_i32_4 : i32
      %10 = arith.extui %9 : i1 to i32
      %c0_i32_5 = arith.constant 0 : i32
      %11 = arith.cmpi ne, %10, %c0_i32_5 : i32
      scf.if %11 {
        %cst_16 = arith.constant 0.000000e+00 : f32
        %27 = vector.broadcast %cst_16 : f32 to vector<1x4x2xf32>
        %c0_17 = arith.constant 0 : index
        %c0_18 = arith.constant 0 : index
        %c0_19 = arith.constant 0 : index
        %28 = vector.load %arg6[%c0_17, %c0_18, %c0_19] : memref<1x4x2xf32, #tpu.memory_space<vmem>>, vector<1x4x2xf32>
        tpu.vector_store %arg6[%c0_17, %c0_18, %c0_19], %27 {strides = array<i32>} : memref<1x4x2xf32, #tpu.memory_space<vmem>>, vector<1x4x2xf32>,
      } else {
      }
      %c0_6 = arith.constant 0 : index
      %c0_7 = arith.constant 0 : index
      %12 = vector.load %arg8[%c0_6, %c0_7] : memref<4x4xbf16, #tpu.memory_space<vmem>>, vector<4x4xbf16>
      %cst = arith.constant dense<0.000000e+00> : vector<4x256xf32>
      %13 = tpu.matmul %12, %2, %cst {dimension_numbers = #tpu.dot_dimension_numbers<[1], [0], [0], [1], [0, 0, 1, 1], [], []>} : vector<4x4xbf16>, vector<4x256xbf16>, vector<4x256xf32> -> vector<4x256xf32>
      %14 = arith.addf %13, %1 : vector<4x256xf32>
      %c0_8 = arith.constant 0 : index
      %c0_9 = arith.constant 0 : index
      %c0_10 = arith.constant 0 : index
      %15 = vector.load %arg6[%c0_8, %c0_9, %c0_10] : memref<1x4x2xf32, #tpu.memory_space<vmem>>, vector<1x4x2xf32>
      %16 = vector.shape_cast %15 : vector<1x4x2xf32> to vector<4x2xf32>
      %cst_11 = arith.constant dense<0.000000e+00> : vector<4xf32>
      %17 = vector.multi_reduction <add>, %14, %cst_11 [1] : vector<4x256xf32> to vector<4xf32>
      %18 = vector.shape_cast %17 : vector<4xf32> to vector<4x1xf32>
      %19 = arith.mulf %14, %14 : vector<4x256xf32>
      %cst_12 = arith.constant dense<0.000000e+00> : vector<4xf32>
      %20 = vector.multi_reduction <add>, %19, %cst_12 [1] : vector<4x256xf32> to vector<4xf32>
      %21 = vector.shape_cast %20 : vector<4xf32> to vector<4x1xf32>
      %22 = tpu.concatenate %18, %21 in 1 : vector<4x1xf32>, vector<4x1xf32> -> vector<4x2xf32>
      %23 = arith.addf %16, %22 : vector<4x2xf32>
      %c0_13 = arith.constant 0 : index
      %c0_14 = arith.constant 0 : index
      %c0_15 = arith.constant 0 : index
      %24 = vector.load %arg6[%c0_13, %c0_14, %c0_15] : memref<1x4x2xf32, #tpu.memory_space<vmem>>, vector<1x4x2xf32>
      %25 = vector.shape_cast %24 : vector<1x4x2xf32> to vector<4x2xf32>
      %26 = vector.shape_cast %23 : vector<4x2xf32> to vector<1x4x2xf32>
      tpu.vector_store %arg6[%c0_13, %c0_14, %c0_15], %26 {strides = array<i32>} : memref<1x4x2xf32, #tpu.memory_space<vmem>>, vector<1x4x2xf32>,
    } else {
    }
    return
  }
  func.func @transform_0(%arg0: i32, %arg1: i32, %arg2: i32) -> i32 {
    %c0_i32 = arith.constant 0 : i32
    %c0_i32_0 = arith.constant 0 : i32
    return %c0_i32 : i32
  }
  func.func @transform_1(%arg0: i32, %arg1: i32, %arg2: i32) -> (i32, i32, i32) {
    %c0_i32 = arith.constant 0 : i32
    %c0_i32_0 = arith.constant 0 : i32
    return %arg0, %c0_i32, %arg2 : i32, i32, i32
  }
  func.func @transform_2(%arg0: i32, %arg1: i32, %arg2: i32) -> (i32, i32, i32) {
    %c0_i32 = arith.constant 0 : i32
    %c0_i32_0 = arith.constant 0 : i32
    %c0_i32_1 = arith.constant 0 : i32
    return %arg0, %c0_i32, %c0_i32_0 : i32, i32, i32
  }
  func.func @transform_3(%arg0: i32, %arg1: i32, %arg2: i32) -> (i32, i32, i32) {
    %c0_i32 = arith.constant 0 : i32
    %c0_i32_0 = arith.constant 0 : i32
    %c0_i32_1 = arith.constant 0 : i32
    return %arg0, %c0_i32, %c0_i32_0 : i32, i32, i32
  }
}

</mosaic_0001>

<bundles_post_ra>
// kernel: tpu_custom_call.1
= control target key start
LH: loop header
LB: loop body
LE: loop exit
PB: predicated region body
PF: predicated region fallthrough
CT: control target
= control target key end

     0   :  { %s990_s0 = inlined_call_operand.<no memory space> [shape: f32[1], index: 0, kind: input, shape index: {}]   ;;  %s991_s1 = inlined_call_operand.hbm [shape: f32[2,4,256], index: 1, kind: input, shape index: {}]   ;;  %s992_s2 = inlined_call_operand.hbm [shape: bf16[2,4,4], index: 2, kind: output, shape index: {0}]   ;;  %s993_s3 = inlined_call_operand.vmem [shape: f32[2,4,2], index: 3, kind: output, shape index: {1}]  }
   0x1   :  { %9 = sst [smem:[#allocation4]] %s990_s0 }
   0x2   :  { %10 = vsyncpa [#allocation6], 0 }
   0x3   :  { %12 = vsyncpa [#allocation6 + $0x1], 0 }
   0x4   :  { %13 = vsyncpa [#allocation7], 0 }
   0x5   :  { %15 = vsyncpa [#allocation7 + $0x1], 0  ;;  %s785_s14 = smov 0   ;;  %s787_s15 = smov 0  }
   0x6   :  { %s789_s16 = smov 0   ;;  %s791_s17 = smov 0  }
   0x7   :  { %s793_s18 = smov 0   ;;  %s795_s19 = smov 0  }
   0x8   :  { %s797_s20 = smov 0   ;;  %s799_s21 = smov 0  }
   0x9 LB: > { %s521_s0 = sadd.s32 4294967295, %s755_s21   ;;  %s522_s22 = sadd.s32 4294967294, %s755_s21   ;;  %s755_s21 = sphi %s799_s21, %s21_s21   ;;  %s751_s20 = sphi %s797_s20, %s1010_s20   ;;  %s747_s19 = sphi %s795_s19, %s1009_s19   ;;  %s743_s18 = sphi %s793_s18, %s1008_s18   ;;  %s739_s17 = sphi %s791_s17, %s1007_s17   ;;  %s735_s16 = sphi %s789_s16, %s1006_s16   ;;  %s731_s15 = sphi %s787_s15, %s1005_s15   ;;  %s727_s14 = sphi %s785_s14, %s1004_s14  }
   0xa   : > { %s36_s23 = sadd.s32 1, %s747_s19  ;;  %s40_s24 = sadd.s32 1, %s751_s20 }
   0xb   : > { %p38_p0 = scmp.ge.s32.totalorder %s36_s23, 2  ;;  %s70_s25 = sadd.s32 1, %s735_s16 }
   0xc   : > { %p77_p1 = scmp.ne.s32.totalorder %s735_s16, %s731_s15  ;;  %p78_p2 = scmp.eq.s32.totalorder %s755_s21, 0 }
   0xd   : > { %s1012_s23 = smov (%p38_p0, %s36_s23), 0  ;;  %s1014_s24 = smov (!%p38_p0, %s40_s24), %s751_s20 }
   0xe   : > { %p836_p3 = por %p78_p2, %p77_p1  ;;  %p83_p4 = scmp.ne.s32.totalorder %s731_s15, %s727_s14 }
   0xf   : > { %p42_p5 = scmp.ge.s32.totalorder %s1014_s24, 2  ;;  %p84_p6 = scmp.eq.s32.totalorder %s521_s0, 0 }
  0x10   : > { %p107_p7 = scmp.eq.s32.totalorder %s521_s0, 3  ;;  %p113_p8 = scmp.eq.s32.totalorder %s522_s22, 3 }
  0x11   : > { %s1016_s24 = smov (%p42_p5, %s1014_s24), 0  ;;  %p844_p9 = por %p84_p6, %p83_p4 }
  0x12   : > { %p848_p10 = por %p107_p7, %p77_p1  ;;  %s65_s29 = ssub.s32 %s751_s20, %s1016_s24 }
  0x13   : > { %p854_p11 = por %p113_p8, %p83_p4  ;;  %p68_p12 = scmp.eq.s32.totalorder %s65_s29, 0 }
  0x14   : > { %s997_s28 = scalar_select %p848_p10, 1, 0 }
  0x15   : > { %s998_s30 = scalar_select %p854_p11, 1, 0 }
  0x16   : > { %p553_p13 = scmp.lt.s32.totalorder %s755_s21, 4  ;;  %s162_s4 = sand.u32 1, %s735_s16  }
  0x17   : > { %s861_s5 = scalar_select %p68_p12, %s735_s16, %s70_s25  }
  0x18   : > { %s525_s6 = sshll.u32 %s162_s4, 3  ;;  %s540_s7 = sshll.u32 %s751_s20, 7 }
  0x19   : > { %s867_s10 = scalar_lea.hbm %s991_s1, %s540_s7  ;;  %s166_s11 = scalar_lea.vmem [#allocation5], %s525_s6 }
  0x1a   : > { %s176_s12 = sshll.u32 %s166_s11, 4  ;;  %p873_p0 = pnand %p553_p13, %p836_p3  ;;  %s869_s12 = int_to_ptr.vmem [resolvable:$true] %s176_s12 }
  0x1b   : > { %s163_s0 = scalar_lea.sflag [#allocation6], %s162_s4  ;;  %s627_s22 = scalar_lea.hbm %s867_s10, 128 }
  0x1c   : > { %p628_p4 = scmp.ne.s32.totalorder %s867_s10, %s627_s22  ;;  %p629_p5 = pneg %p873_p0 }
  0x1d   : > { %s632_s26 = scalar_lea.hbm %s991_s1, 256  ;;  %p633_p3 = scmp.lt.u32.totalorder %s867_s10, %s991_s1 }
  0x1e   : > { %p630_p6 = pnand %p629_p5, %p628_p4  ;;  %p634_p8 = scmp.lt.u32.totalorder %s632_s26, %s627_s22 }
  0x1f   : > { %p636_p13 = scmp.lt.u32.totalorder %s627_s22, %s867_s10 }
  0x20   : > { %p631_p7 = pneg %p630_p6  ;;  %p635_p12 = por %p634_p8, %p633_p3 }
  0x22   : > { %p637_p1 = por %p636_p13, %p635_p12 }
  0x24   : > { %p638_p2 = pnand %p637_p1, %p631_p7 }
  0x26   : > { %641 = shalt.err (!%p638_p2)
}
  0x27   : > { %s642_s4 = scalar_lea.vmem %s869_s12, 128  ;;  %s757_s8 = smov [#allocation5]  }
  0x28   : > { %p643_p4 = scmp.ne.s32.totalorder %s869_s12, %s642_s4  ;;  %s647_s9 = sshll.u32 %s757_s8, 4  ;;  %s648_s9 = int_to_ptr.vmem [resolvable:$false] %s647_s9 }
  0x29   : > { %s649_s11 = scalar_lea.vmem %s648_s9, 256  ;;  %p650_p10 = scmp.lt.s32.totalorder %s869_s12, %s648_s9 }
  0x2a   : > { %p645_p6 = pnand %p643_p4, %p629_p5  ;;  %p651_p3 = scmp.lt.s32.totalorder %s649_s11, %s642_s4 }
  0x2c   : > { %p646_p11 = pneg %p645_p6  ;;  %p652_p8 = por %p651_p3, %p650_p10 }
  0x2e   : > { %p653_p12 = pnand %p652_p8, %p646_p11 }
  0x30   : > { %656 = shalt.err (!%p653_p12)
}
  0x31   : > { %548 = dma.hbm_to_vmem [thread:$0]  (!%p873_p0), %s867_s10, 128, %s869_s12, %s163_s0  }
  0x32   : > { %p1000_p1 = scmp.lt.s32.totalorder %s755_s21, 5  ;;  %p1001_p2 = scmp.ge.s32.totalorder %s755_s21, 1 }
  0x34   : > { %p182_p5 = pnand %p1001_p2, %p1000_p1 }
  0x35   : > { %s909_s22 = sand.u32 (!%p182_p5), 1, %s731_s15  }
  0x36   : > { %185 = sbr.rel (%p182_p5) target bundleno = 1023 (0x3ff), region = 28  ;;  %s529_s25 = sshll.u32 (!%p182_p5), %s909_s22, 3 }
  0x37   : > { %s188_s29 = scalar_lea.sflag (!%p182_p5), [#allocation6], %s909_s22  ;;  %s191_s26 = scalar_lea.vmem (!%p182_p5), [#allocation5], %s529_s25 }
  0x3d   : > { %718 = dma.done.wait (%p844_p9), %s188_s29, 128  }
  0x3e   : > { %720 = vsyncadd (%p844_p9), %s188_s29, 4294967168  ;;  %s530_s10 = sshll.u32 %s909_s22, 1  ;;  %p219_p10 = scmp.lt.s32.totalorder %s743_s18, 1  ;;  %v224_v0 = vld [vmem:[%s191_s26] sm:$0xff] }
  0x3f   : > { %v226_v1 = vcombine.high %v224_v0, %v224_v0  ;;  %v228_v2 = vpack.c.bf16 %v224_v0, %v224_v0  ;;  %s925_s4 = scalar_lea.vmem [#allocation8], %s530_s10  ;;  %p532_p9 = scmp.ne.s32.totalorder %s739_s17, 0 }
  0x40   : > { %s220_s12 = scalar_select %p219_p10, %s743_s18, 1 }
  0x41   : > { %v229_v3 = vpack.c.bf16 %v226_v1, %v226_v1  ;;  %233 = sbr.rel (%p532_p9) target bundleno = 624 (0x270), region = 36  ;;  %vm238_vm0 = vcmask (!%p532_p9), 27648   ;;  %v758_v4 = vmov (!%p532_p9), 0.0   ;;  %s299_s27 = sld [smem:[#allocation4]] (!%p532_p9)  ;;  %vm303_vm1 = vcmask (!%p532_p9), 25600  }
  0x42   : > { %s531_s13 = sshll.u32 %s220_s12, 2  ;;  %239 = vst.msk [vmem:[#allocation2] sm:$0xf] (!%p532_p9), %vm238_vm0, %v758_v4 }
  0x43   : > { %s923_s7 = scalar_lea.vmem %s993_s3, %s531_s13  ;;  %241 = vmatprep.subr.bf16.mxu0 (!%p532_p9), %v229_v3  ;;  %273 = vmatprep.mubr.bf16.mxu0 (!%p532_p9), %v229_v3 }
  0x44   : > { %242 = vmatpush1.bf16.xpose.msra.mxu0 (!%p532_p9), %v228_v2 }
  0x47   : > { %v300_v20 = vstv (!%p532_p9), %s299_s27 }
  0x49   : > { %v240_v5 = vld [vmem:[#allocation2] sm:$0xf] }
  0x4b   : > { %274 = vmatmul.mubr.bf16.vlgmr.msra.gmra.mrb[0].mxu0 %v228_v2 }
 0x11e   : > { %v275_v6 = vpop.f32.mrb[0].mxu0 }
 0x11f   : > { %v281_v7 = vadd.f32 %v275_v6, %v240_v5  ;;  %v277_v8 = vpop.f32.mrb[1].mxu0 }
 0x120   : > { %v278_v9 = vpop.f32.mrb[2].mxu0 }
 0x121   : > { %283 = vst.msk [vmem:[#allocation2] sm:$0xf] %vm238_vm0, %v281_v7  ;;  %v279_v10 = vpop.f32.mrb[3].mxu0 }
 0x128   : > { %v287_v11 = vld [vmem:[#allocation2] sm:$0xf] }
 0x129   : > { %v288_v12 = vsel %vm238_vm0, %v287_v11, inf }
 0x12a   : > { %289 = vmin.xlane.f32.xlu0 %v288_v12 }
 0x1b7   : > { %v290_v13 = vpop.xlane.xlu0 %289 }
 0x1b8   : > { %v291_v14 = vsub.f32 %v290_v13, %v287_v11 }
 0x1ba   : > { %v292_v15 = vmul.f32 1.442695, %v291_v14 }
 0x1bc   : > { %623 = vpow2.f32 %v292_v15 }
 0x1c6   : > { %v624_v16 = vpop.eup %623 }
 0x1c7   : > { %v294_v17 = vsel %vm238_vm0, %v624_v16, 0.0 }
 0x1c8   : > { %295 = vadd.xlane.f32.xlu0 %v294_v17 }
 0x255   : > { %v296_v18 = vpop.xlane.xlu0 %295 }
 0x256   : > { %625 = vrcp.f32 %v296_v18 }
 0x260   : > { %v626_v19 = vpop.eup %625 }
 0x261   : > { %v298_v21 = vmul.f32 %v626_v19, %v624_v16 }
 0x263   : > { %v301_v22 = vmul.f32 %v300_v20, %v298_v21 }
 0x265   : > { %v302_v23 = vpack.c.bf16 %v301_v22, %v301_v22 }
 0x267   : > { %304 = vst.msk [vmem:[#allocation3] sm:$0x3] %vm303_vm1, %v302_v23 }
 0x26e   : > { %v305_v24 = vld [vmem:[#allocation3] sm:$0x3] }
 0x26f   : > { %306 = vst.msk [vmem:[%s925_s4] sm:$0x3] %vm303_vm1, %v305_v24 }
 0x270 PF: > { %p533_p11 = scmp.ne.s32.totalorder %s739_s17, 1 }
 0x271   : > { %vm322_vm2 = vcmask (!%p533_p11), 1041408   ;;  %v759_v26 = vmov (!%p533_p11), 0   ;;  %v317_v27 = vld [vmem:[#allocation3] sm:$0x3] (!%p533_p11)  ;;  %vm318_vm3 = vcmask (!%p533_p11), 31744   ;;  %vm371_vm4 = vcmask (!%p533_p11), 1043456  }
 0x272   : > { %310 = sbr.rel (%p533_p11) target bundleno = 998 (0x3e6), region = 48  ;;  %534 = vmatprep.subr.msk.bf16.mxu0 (!%p533_p11), %vm322_vm2, %v229_v3  ;;  %v324_v25 = vsel (!%p533_p11), %vm322_vm2, %v228_v2, 0  ;;  %361 = vmatprep.mubr.bf16.mxu0 (!%p533_p11), %v759_v26  ;;  %vm315_vm5 = vcmask (!%p533_p11), 11264   ;;  %v760_v42 = vmov (!%p533_p11), 0.0   ;;  %vm384_vm6 = vcmask (!%p533_p11), 7168  }
 0x273   : > { %330 = vmatpush1.bf16.msra.mxu0 (!%p533_p11), %v324_v25  ;;  %316 = vst.msk [vmem:[%s923_s7] sm:$0xf] (!%p533_p11), %vm315_vm5, %v760_v42 }
 0x276   : > { %535 = vmatmul.mubr.msk.bf16.vlgmr.msra.gmra.mrb[0].mxu0 (!%p533_p11), %vm318_vm3, %v317_v27 }
 0x27a   : > { %v370_v44 = vld [vmem:[%s923_s7] sm:$0xf] }
 0x349   : > { %v363_v28 = vpop.f32.mrb[0].mxu0 }
 0x34a   : > { %v364_v29 = vadd.f32 %v363_v28, %v224_v0  ;;  %v365_v30 = vpop.f32.mrb[1].mxu0 }
 0x34b   : > { %v366_v31 = vadd.f32 %v365_v30, %v226_v1  ;;  %v367_v32 = vpop.f32.mrb[2].mxu0 }
 0x34c   : > { %v377_v33 = vmul.f32 %v364_v29, %v364_v29  ;;  %v368_v34 = vpop.f32.mrb[3].mxu0  ;;  %v372_v35 = vsel %vm371_vm4, %v364_v29, 0.0 }
 0x34d   : > { %v378_v36 = vmul.f32 %v366_v31, %v366_v31  ;;  %v373_v37 = vsel %vm371_vm4, %v366_v31, 0.0 }
 0x34e   : > { %v374_v38 = vadd.f32 %v373_v37, %v372_v35  ;;  %v379_v39 = vsel %vm371_vm4, %v377_v33, 0.0 }
 0x34f   : > { %v380_v40 = vsel %vm371_vm4, %v378_v36, 0.0 }
 0x350   : > { %375 = vadd.xlane.f32.xlu0 %v374_v38  ;;  %v381_v41 = vadd.f32 %v380_v40, %v379_v39 }
 0x354   : > { %382 = vadd.xlane.f32.xlu0 %v381_v41 }
 0x3dd   : > { %v376_v43 = vpop.xlane.xlu0 %375 }
 0x3e1   : > { %v383_v45 = vpop.xlane.xlu0 %382 }
 0x3e2   : > { %v385_v46 = vsel %vm384_vm6, %v376_v43, %v383_v45 }
 0x3e3   : > { %v386_v47 = vadd.f32 %v385_v46, %v370_v44 }
 0x3e5   : > { %388 = vst.msk [vmem:[%s923_s7] sm:$0xf] %vm315_vm5, %v386_v47 }
 0x3e6 PF: > { %s537_s17 = sshll.u32 %s743_s18, 5  ;;  %s407_s25 = sshll.u32 %s925_s4, 4  ;;  %s408_s25 = int_to_ptr.vmem [resolvable:$true] %s407_s25 }
 0x3e7   : > { %s941_s11 = scalar_lea.hbm %s992_s2, %s537_s17  ;;  %s390_s29 = scalar_lea.sflag [#allocation7], %s909_s22 }
 0x3e8   : > { %s657_s26 = scalar_lea.vmem %s408_s25, 32  ;;  %p1002_p7 = scmp.ne.s32.totalorder %s997_s28, 0 }
 0x3e9   : > { %p658_p0 = scmp.ne.s32.totalorder %s408_s25, %s657_s26  ;;  %s761_s10 = smov [#allocation8]  }
 0x3ea   : > { %s661_s12 = sshll.u32 %s761_s10, 4  ;;  %s662_s12 = int_to_ptr.vmem [resolvable:$false] %s661_s12 }
 0x3eb   : > { %p659_p13 = pnand %p658_p0, %p1002_p7  ;;  %s663_s13 = scalar_lea.vmem %s662_s12, 64 }
 0x3ec   : > { %p664_p6 = scmp.lt.s32.totalorder %s408_s25, %s662_s12  ;;  %p665_p3 = scmp.lt.s32.totalorder %s663_s13, %s657_s26 }
 0x3ed   : > { %p660_p4 = pneg %p659_p13 }
 0x3ee   : > { %p666_p8 = por %p665_p3, %p664_p6 }
 0x3f0   : > { %p667_p12 = pnand %p666_p8, %p660_p4 }
 0x3f2   : > { %670 = shalt.err (!%p667_p12)
}
 0x3f3   : > { %s671_s18 = scalar_lea.hbm %s941_s11, 32  ;;  %s675_s6 = scalar_lea.hbm %s992_s2, 64 }
 0x3f4   : > { %p672_p1 = scmp.ne.s32.totalorder %s941_s11, %s671_s18  ;;  %p676_p10 = scmp.lt.u32.totalorder %s941_s11, %s992_s2 }
 0x3f5   : > { %p677_p9 = scmp.lt.u32.totalorder %s675_s6, %s671_s18  ;;  %p679_p0 = scmp.lt.u32.totalorder %s671_s18, %s941_s11 }
 0x3f6   : > { %p673_p2 = pnand %p672_p1, %p1002_p7 }
 0x3f7   : > { %p678_p11 = por %p677_p9, %p676_p10 }
 0x3f8   : > { %p674_p5 = pneg %p673_p2 }
 0x3f9   : > { %p680_p13 = por %p679_p0, %p678_p11 }
 0x3fb   : > { %p681_p4 = pnand %p680_p13, %p674_p5 }
 0x3fd   : > { %684 = shalt.err (!%p681_p4)
}
 0x3fe   : > { %543 = dma.vmem_to_hbm [thread:$0]  (%p1002_p7), %s408_s25, 32, %s941_s11, %s390_s29  }
 0x3ff PF: > { %p554_p6 = scmp.ge.s32.totalorder %s755_s21, 2  ;;  %s422_s27 = sand.u32 1, %s727_s14  }
 0x400   : > { %p1003_p3 = scmp.ne.s32.totalorder %s998_s30, 0  ;;  %s423_s17 = scalar_lea.sflag [#allocation7], %s422_s27 }
 0x402   : > { %p550_p8 = pnand %p554_p6, %p1003_p3 }
 0x404   : > { %722 = dma.done.wait (!%p550_p8), %s423_s17, 32  }
 0x405   : > { %724 = vsyncadd (!%p550_p8), %s423_s17, 4294967264  ;;  %s21_s21 = sadd.s32 1, %s755_s21   ;;  %s1004_s14 = smov %s731_s15 }
 0x406   : > { %p18_p12 = scmp.ge.s32.totalorder %s21_s21, 6   ;;  %s1005_s15 = smov %s735_s16 }
 0x407   : > { %s1006_s16 = smov %s861_s5  ;;  %s1007_s17 = smov %s747_s19 }
 0x408   : > { %s1008_s18 = smov %s751_s20  ;;  %s1009_s19 = smov %s1012_s23 }
 0x409   : > { %s1010_s20 = smov %s1016_s24  ;;  %20 = sbr.rel (!%p18_p12) target bundleno = 9 (0x9), region = 105 }
 0x410   :  { %435 = vsyncpa [#allocation6], 1 }
 0x411   :  { %437 = vsyncpa [#allocation6 + $0x1], 1 }
 0x412   :  { %438 = vsyncpa [#allocation7], 1 }
 0x413   :  { %440 = vsyncpa [#allocation7 + $0x1], 1 }

</bundles_post_ra>
